<compile_context>
chip_gen: v5e
topology: v5e:2x2
jax: 0.10.0
libtpu: 0.0.40
codegen_flags: <defaults>
</compile_context>

<pallas_src>
import functools

import jax
import jax.numpy as jnp
from jax import lax
from jax.experimental import pallas as pl
from jax.experimental.pallas import tpu as pltpu


# ----------------------------------------------------------------------------
# Kernels
# ----------------------------------------------------------------------------
def _proj_ln_kernel(x_ref, w_ref, b_ref, g_ref, beta_ref, o_ref, *, eps):
    """Single K pass: y = x @ W + b, then LayerNorm over the last dim."""
    y = jnp.dot(x_ref[...], w_ref[...], preferred_element_type=jnp.float32)
    y = y + b_ref[...]
    mean = jnp.mean(y, axis=-1, keepdims=True)
    centered = y - mean
    var = jnp.mean(centered * centered, axis=-1, keepdims=True)  # biased (torch LN)
    inv = lax.rsqrt(var + eps)
    o_ref[...] = (centered * inv * g_ref[...] + beta_ref[...]).astype(o_ref.dtype)


def _proj_ln_ksplit_kernel(x_ref, w_ref, b_ref, g_ref, beta_ref, o_ref,
                           acc_ref, *, eps):
    """Fallback when the (K, E) weight can't stay VMEM-resident: K is a
    reduction grid axis, f32 accumulator persists across K steps."""
    k = pl.program_id(1)
    part = jnp.dot(x_ref[...], w_ref[...], preferred_element_type=jnp.float32)

    @pl.when(k == 0)
    def _():
        acc_ref[...] = part          # init with the first partial (no zero-fill)

    @pl.when(k != 0)
    def _():
        acc_ref[...] += part

    @pl.when(k == pl.num_programs(1) - 1)
    def _():
        y = acc_ref[...] + b_ref[...]
        mean = jnp.mean(y, axis=-1, keepdims=True)
        centered = y - mean
        var = jnp.mean(centered * centered, axis=-1, keepdims=True)
        inv = lax.rsqrt(var + eps)
        o_ref[...] = (centered * inv * g_ref[...] + beta_ref[...]).astype(o_ref.dtype)


# ----------------------------------------------------------------------------
# Tiling helpers
# ----------------------------------------------------------------------------
def _round_up(x, m):
    return (x + m - 1) // m * m


def _pick_tile(total, base, target):
    """Largest multiple of `base` that divides `total` and is <= max(target, base)."""
    best = base
    cap = max(target, base)
    d = base
    while d <= total:
        if total % d == 0 and d <= cap:
            best = d
        d += base
    return best


def _tpu_hw_info():
    """(vmem_capacity_bytes, tensorcores_per_chip) with safe fallbacks."""
    vmem_cap = 64 << 20          # conservative default (v7x-sized)
    num_cores = 1
    try:
        info = pltpu.get_tpu_info()
        vmem_cap = int(getattr(info, "vmem_capacity_bytes", vmem_cap))
    except Exception:
        pass
    try:
        kind = jax.devices()[0].device_kind.lower()
        if ("v4" in kind) or ("v5p" in kind) or ("v7" in kind):
            num_cores = 2        # megacore / dual-TensorCore chips
    except Exception:
        pass
    return vmem_cap, num_cores


# ----------------------------------------------------------------------------
# Fused (patches @ W) -> +bias -> LayerNorm
# ----------------------------------------------------------------------------
def _fused_proj_layernorm(patches, w_kE, bias, gamma, beta, *, eps=1e-5,
                          out_dtype=jnp.float32, row_tile=None,
                          force_k_split=False, split_tk=None):
    """patches: (M, K); w_kE: (K, E); bias/gamma/beta: (E,). Returns (M, E)."""
    M, K = patches.shape
    Kw, E = w_kE.shape
    assert Kw == K, (Kw, K)
    # NOTE: if E is not a multiple of 128 the output stores become lane-masked
    # (correct, just slower). Typical embed_dims (128/768/1024) are fine.

    in_bytes = jnp.dtype(patches.dtype).itemsize
    out_bytes = jnp.dtype(out_dtype).itemsize
    sub = {1: 32, 2: 16}.get(in_bytes, 8)          # sublane packing multiple

    vmem_cap, num_cores = _tpu_hw_info()
    budget = max(32 << 20, (vmem_cap * 3) // 4)    # ~48 MiB v7x, ~96 MiB v5e/v6e
    tm_cap = 1024 if budget >= (80 << 20) else 512

    # ---- row tile: biggest VMEM-fitting multiple of `sub`; no M padding ----
    if row_tile is not None:
        tm = min(int(row_tile), M)
        assert tm == M or tm % sub == 0, (tm, sub)
    elif M % sub == 0 or M < tm_cap:
        tm = min(tm_cap, M)        # tm == M is exempt from the sublane rule
    else:
        tm = tm_cap

    def need_single(tm_):          # weight VMEM-resident, double-buffered I/O
        return (2 * tm_ * K * in_bytes + 2 * K * E * in_bytes
                + 2 * tm_ * E * out_bytes + tm_ * E * 4 + 6 * E * 4)

    while need_single(tm) > budget and tm > sub:
        tm = max(sub, _round_up(tm // 2, sub))

    use_split = force_k_split or need_single(tm) > budget

    # Dual-TC chips (v4/v5p/v7x): keep the parallel grid length a multiple of
    # the core count when the grid is short; skip on single-TC chips so small
    # inputs aren't split for no gain.
    if row_tile is None and num_cores > 1:
        nb = pl.cdiv(M, tm)
        if nb % num_cores != 0 and nb < 8:
            cand = _round_up(pl.cdiv(M, _round_up(nb, num_cores)), sub)
            if sub <= cand < tm and cand <= M and pl.cdiv(M, cand) % num_cores == 0:
                tm = cand

    bias2 = bias.reshape(1, E).astype(jnp.float32)
    gamma2 = gamma.reshape(1, E).astype(jnp.float32)
    beta2 = beta.reshape(1, E).astype(jnp.float32)

    cost = pl.CostEstimate(
        flops=2 * M * K * E,
        transcendentals=M,  # one rsqrt per row
        bytes_accessed=in_bytes * (M * K + K * E) + out_bytes * M * E + 3 * 4 * E,
    )

    if not use_split:
        # ---------------- main path: whole K in one MXU pass -----------------
        # x block (tm, K): last dim equals the full array dim, so no K padding
        # (and no extra HBM pad pass) even when K is small (e.g. 32).  The
        # weight / bias / LN params use constant index_maps -> fetched once.
        grid = (pl.cdiv(M, tm),)   # ragged last tile handled by Pallas masking
        vmem_limit = int(max(32 << 20, min(budget, need_single(tm) + (8 << 20))))
        return pl.pallas_call(
            functools.partial(_proj_ln_kernel, eps=eps),
            out_shape=jax.ShapeDtypeStruct((M, E), out_dtype),
            grid_spec=pltpu.PrefetchScalarGridSpec(
                num_scalar_prefetch=0,
                grid=grid,
                in_specs=[
                    pl.BlockSpec((tm, K), lambda i: (i, 0)),   # patch rows
                    pl.BlockSpec((K, E), lambda i: (0, 0)),    # weight (resident)
                    pl.BlockSpec((1, E), lambda i: (0, 0)),    # proj bias
                    pl.BlockSpec((1, E), lambda i: (0, 0)),    # LN gamma
                    pl.BlockSpec((1, E), lambda i: (0, 0)),    # LN beta
                ],
                out_specs=pl.BlockSpec((tm, E), lambda i: (i, 0)),
            ),
            compiler_params=pltpu.CompilerParams(
                dimension_semantics=("parallel",),
                vmem_limit_bytes=vmem_limit,
            ),
            cost_estimate=cost,
        )(patches, w_kE, bias2, gamma2, beta2)

    # -------- fallback: very large K*E -> split K with an accumulator --------
    K_pad = _round_up(K, 128)
    if K_pad != K:
        patches = jnp.pad(patches, ((0, 0), (0, K_pad - K)))
        w_kE = jnp.pad(w_kE, ((0, K_pad - K), (0, 0)))
    if split_tk is not None:
        tk = int(split_tk)
        assert tk % 128 == 0 and K_pad % tk == 0, (tk, K_pad)
    else:
        tk = _pick_tile(K_pad, 128, 2048)

    def need_split(tm_, tk_):
        return (2 * tm_ * tk_ * in_bytes + 2 * tk_ * E * in_bytes
                + 2 * tm_ * E * out_bytes + tm_ * E * 4 + 6 * E * 4)

    while need_split(tm, tk) > budget:
        if tk > 128:
            tk = _pick_tile(K_pad, 128, tk // 2)
        elif tm > sub:
            tm = max(sub, _round_up(tm // 2, sub))
        else:
            break

    grid = (pl.cdiv(M, tm), K_pad // tk)
    vmem_limit = int(max(32 << 20, min(budget, need_split(tm, tk) + (8 << 20))))
    return pl.pallas_call(
        functools.partial(_proj_ln_ksplit_kernel, eps=eps),
        out_shape=jax.ShapeDtypeStruct((M, E), out_dtype),
        grid_spec=pltpu.PrefetchScalarGridSpec(
            num_scalar_prefetch=0,
            grid=grid,
            in_specs=[
                pl.BlockSpec((tm, tk), lambda i, k: (i, k)),   # patch rows slab
                pl.BlockSpec((tk, E), lambda i, k: (k, 0)),    # weight slab
                pl.BlockSpec((1, E), lambda i, k: (0, 0)),     # proj bias
                pl.BlockSpec((1, E), lambda i, k: (0, 0)),     # LN gamma
                pl.BlockSpec((1, E), lambda i, k: (0, 0)),     # LN beta
            ],
            out_specs=pl.BlockSpec((tm, E), lambda i, k: (i, 0)),
            scratch_shapes=[pltpu.VMEM((tm, E), jnp.float32)],
        ),
        compiler_params=pltpu.CompilerParams(
            dimension_semantics=("parallel", "arbitrary"),
            vmem_limit_bytes=vmem_limit,
        ),
        cost_estimate=cost,
    )(patches, w_kE, bias2, gamma2, beta2)


# ----------------------------------------------------------------------------
# PatchEmbed forward (JAX glue + Pallas hot path)
# ----------------------------------------------------------------------------
def patch_embed_forward(x, params, vol_size, patch_size, *,
                        compute_dtype=jnp.bfloat16, out_dtype=None,
                        channels_last=False, row_tile=None,
                        force_k_split=False, split_tk=None):
    """x: (B, C, D, H, W) NCDHW like PyTorch.

    Returns (B, E, D', H', W') (module semantics).  With channels_last=True,
    returns (B, D', H', W', E) so a token-stack consumer can skip the final
    transpose pass.  Pass out_dtype=jnp.bfloat16 to halve output HBM bytes
    when downstream activations are bf16.
    """
    B, C, D, H, W = x.shape
    assert (D, H, W) == tuple(vol_size), "input volume size mismatch"
    pD, pH, pW = patch_size
    Dp, Hp, Wp = D // pD, H // pH, W // pW
    E = params["proj_w"].shape[0]
    K = C * pD * pH * pW
    if out_dtype is None:
        out_dtype = x.dtype        # module semantics: keep the input dtype

    # Cast to the matmul compute dtype *before* the patchify transpose so the
    # single strided copy XLA emits moves half the bytes (cast fuses into it).
    xc = x.astype(compute_dtype)

    # Extract non-overlapping patches -> (B*Dp*Hp*Wp, C*pD*pH*pW).
    # Row order matches permute(0,2,3,4,1).reshape(B,-1,C); column order matches
    # the Conv3d weight layout (in_chans, kD, kH, kW).  With the K/M zero-pads
    # removed this is now exactly one XLA copy pass over the input.
    # TODO(synk): fold this patchify copy into the kernel (5-D BlockSpec over
    # (b, d') blocks + in-VMEM flatten) to remove the last extra HBM pass.
    xp = xc.reshape(B, C, Dp, pD, Hp, pH, Wp, pW)
    xp = xp.transpose(0, 2, 4, 6, 1, 3, 5, 7)      # (B, Dp, Hp, Wp, C, pD, pH, pW)
    patches = xp.reshape(B * Dp * Hp * Wp, K)

    # Conv3d weight (E, C, pD, pH, pW) -> (K, E) for patches @ W.
    w_kE = params["proj_w"].reshape(E, K).T.astype(compute_dtype)

    out_flat = _fused_proj_layernorm(
        patches, w_kE, params["proj_b"], params["ln_w"], params["ln_b"],
        eps=1e-5, out_dtype=out_dtype, row_tile=row_tile,
        force_k_split=force_k_split, split_tk=split_tk,
    )  # (B*Dp*Hp*Wp, E)

    out = out_flat.reshape(B, Dp, Hp, Wp, E)
    if channels_last:
        return out
    # Match the PyTorch module output layout (B, E, D', H', W').
    return out.transpose(0, 4, 1, 2, 3)


def init_params(key, in_chans, embed_dim, patch_size):
    pD, pH, pW = patch_size
    k1, k2 = jax.random.split(key)
    fan_in = in_chans * pD * pH * pW
    bound = 1.0 / (fan_in ** 0.5)
    proj_w = jax.random.uniform(
        k1, (embed_dim, in_chans, pD, pH, pW), jnp.float32, -bound, bound
    )
    proj_b = jax.random.uniform(k2, (embed_dim,), jnp.float32, -bound, bound)
    ln_w = jnp.ones((embed_dim,), jnp.float32)
    ln_b = jnp.zeros((embed_dim,), jnp.float32)
    return {"proj_w": proj_w, "proj_b": proj_b, "ln_w": ln_w, "ln_b": ln_b}


if __name__ == "__main__":
    def reference(x, params, patch_size):
        B, C, D, H, W = x.shape
        pD, pH, pW = patch_size
        Dp, Hp, Wp = D // pD, H // pH, W // pW
        E = params["proj_w"].shape[0]
        xp = x.reshape(B, C, Dp, pD, Hp, pH, Wp, pW)
        xp = xp.transpose(0, 2, 4, 6, 1, 3, 5, 7).reshape(B * Dp * Hp * Wp, -1)
        y = xp @ params["proj_w"].reshape(E, -1).T + params["proj_b"]
        mean = y.mean(-1, keepdims=True)
        var = ((y - mean) ** 2).mean(-1, keepdims=True)
        y = (y - mean) / jnp.sqrt(var + 1e-5) * params["ln_w"] + params["ln_b"]
        return y.reshape(B, Dp, Hp, Wp, E).transpose(0, 4, 1, 2, 3)

    key = jax.random.PRNGKey(0)
    kx, kp, k2x, k2p = jax.random.split(key, 4)

    # --- config 1: vol 8^3, patch 2^3, C=4, E=128  (K=32, M=128) ---
    vol_size, patch_size = (8, 8, 8), (2, 2, 2)
    in_chans, embed_dim, B = 4, 128, 2
    x = jax.random.normal(kx, (B, in_chans) + vol_size, jnp.float32)
    params = init_params(kp, in_chans, embed_dim, patch_size)
    ref = reference(x, params, patch_size)

    # bf16 MXU inputs (default fast path).
    fwd_bf16 = jax.jit(functools.partial(
        patch_embed_forward, vol_size=vol_size, patch_size=patch_size))
    out = jax.block_until_ready(fwd_bf16(x, params))
    assert out.shape == ref.shape, out.shape
    assert jnp.allclose(out, ref, atol=3e-2, rtol=3e-2), float(
        jnp.max(jnp.abs(out - ref)))

    # f32 compute path must match tightly.
    fwd_f32 = jax.jit(functools.partial(
        patch_embed_forward, vol_size=vol_size, patch_size=patch_size,
        compute_dtype=jnp.float32))
    out_f32 = jax.block_until_ready(fwd_f32(x, params))
    assert jnp.allclose(out_f32, ref, atol=1e-4, rtol=1e-4), float(
        jnp.max(jnp.abs(out_f32 - ref)))

    # Ragged-M edge tiles (cdiv grid, masked last tile) verified on-device.
    fwd_ragged = jax.jit(functools.partial(
        patch_embed_forward, vol_size=vol_size, patch_size=patch_size,
        compute_dtype=jnp.float32, row_tile=48))
    out_r = jax.block_until_ready(fwd_ragged(x, params))
    assert jnp.allclose(out_r, ref, atol=1e-4, rtol=1e-4), float(
        jnp.max(jnp.abs(out_r - ref)))

    # channels_last option (skips the final channels-first transpose pass).
    fwd_cl = jax.jit(functools.partial(
        patch_embed_forward, vol_size=vol_size, patch_size=patch_size,
        compute_dtype=jnp.float32, channels_last=True))
    out_cl = jax.block_until_ready(fwd_cl(x, params))
    assert jnp.allclose(out_cl, jnp.moveaxis(ref, 1, -1), atol=1e-4, rtol=1e-4)

    # --- config 2: patch 4^3 (K=256), forcing the K-split fallback kernel ---
    vol2, patch2 = (8, 8, 8), (4, 4, 4)
    x2 = jax.random.normal(k2x, (B, in_chans) + vol2, jnp.float32)
    params2 = init_params(k2p, in_chans, embed_dim, patch2)
    ref2 = reference(x2, params2, patch2)
    fwd_split = jax.jit(functools.partial(
        patch_embed_forward, vol_size=vol2, patch_size=patch2,
        compute_dtype=jnp.float32, force_k_split=True, split_tk=128))
    out2 = jax.block_until_ready(fwd_split(x2, params2))
    assert jnp.allclose(out2, ref2, atol=1e-4, rtol=1e-4), float(
        jnp.max(jnp.abs(out2 - ref2)))

    print("KERNEL_OK")
</pallas_src>

<mosaic_0001>
module attributes {stable_mosaic.version = 11 : i64} {
  func.func @_proj_ln_kernel(%arg0: i32, %arg1: memref<128x32xbf16, #tpu.memory_space<vmem>>, %arg2: memref<32x128xbf16, #tpu.memory_space<vmem>>, %arg3: memref<1x128xf32, #tpu.memory_space<vmem>>, %arg4: memref<1x128xf32, #tpu.memory_space<vmem>>, %arg5: memref<1x128xf32, #tpu.memory_space<vmem>>, %arg6: memref<128x128xf32, #tpu.memory_space<vmem>>) attributes {dimension_semantics = [#tpu.dimension_semantics<parallel>], iteration_bounds = array<i64: 1>, scalar_prefetch = 0 : i64, scratch_operands = 0 : i64, tpu.core_type = #tpu.core_type<tc>, window_params = [{transform_indices = @transform_0, window_bounds = array<i64: 128, 32>}, {pipeline_mode = #tpu.pipeline_mode<synchronous>, transform_indices = @transform_1, window_bounds = array<i64: 32, 128>}, {pipeline_mode = #tpu.pipeline_mode<synchronous>, transform_indices = @transform_2, window_bounds = array<i64: 1, 128>}, {pipeline_mode = #tpu.pipeline_mode<synchronous>, transform_indices = @transform_3, window_bounds = array<i64: 1, 128>}, {pipeline_mode = #tpu.pipeline_mode<synchronous>, transform_indices = @transform_4, window_bounds = array<i64: 1, 128>}, {transform_indices = @transform_5, window_bounds = array<i64: 128, 128>}]} {
    %c0 = arith.constant 0 : index
    %c0_0 = arith.constant 0 : index
    %0 = vector.load %arg1[%c0, %c0_0] : memref<128x32xbf16, #tpu.memory_space<vmem>>, vector<128x32xbf16>
    %c0_1 = arith.constant 0 : index
    %c0_2 = arith.constant 0 : index
    %1 = vector.load %arg2[%c0_1, %c0_2] : memref<32x128xbf16, #tpu.memory_space<vmem>>, vector<32x128xbf16>
    %cst = arith.constant dense<0.000000e+00> : vector<128x128xf32>
    %2 = tpu.matmul %0, %1, %cst {dimension_numbers = #tpu.dot_dimension_numbers<[1], [0], [0], [1], [0, 0, 1, 1], [], []>} : vector<128x32xbf16>, vector<32x128xbf16>, vector<128x128xf32> -> vector<128x128xf32>
    %c0_3 = arith.constant 0 : index
    %c0_4 = arith.constant 0 : index
    %3 = vector.load %arg3[%c0_3, %c0_4] : memref<1x128xf32, #tpu.memory_space<vmem>>, vector<1x128xf32>
    %4 = vector.broadcast %3 : vector<1x128xf32> to vector<128x128xf32>
    %5 = arith.addf %2, %4 : vector<128x128xf32>
    %cst_5 = arith.constant dense<0.000000e+00> : vector<128xf32>
    %6 = vector.multi_reduction <add>, %5, %cst_5 [1] : vector<128x128xf32> to vector<128xf32>
    %7 = vector.shape_cast %6 : vector<128xf32> to vector<128x1xf32>
    %cst_6 = arith.constant 1.280000e+02 : f32
    %8 = vector.broadcast %cst_6 : f32 to vector<128x1xf32>
    %9 = arith.divf %7, %8 : vector<128x1xf32>
    %10 = vector.broadcast %9 : vector<128x1xf32> to vector<128x128xf32>
    %11 = arith.subf %5, %10 : vector<128x128xf32>
    %12 = arith.mulf %11, %11 : vector<128x128xf32>
    %cst_7 = arith.constant dense<0.000000e+00> : vector<128xf32>
    %13 = vector.multi_reduction <add>, %12, %cst_7 [1] : vector<128x128xf32> to vector<128xf32>
    %14 = vector.shape_cast %13 : vector<128xf32> to vector<128x1xf32>
    %cst_8 = arith.constant 1.280000e+02 : f32
    %15 = vector.broadcast %cst_8 : f32 to vector<128x1xf32>
    %16 = arith.divf %14, %15 : vector<128x1xf32>
    %cst_9 = arith.constant 9.99999974E-6 : f32
    %17 = vector.broadcast %cst_9 : f32 to vector<128x1xf32>
    %18 = arith.addf %16, %17 : vector<128x1xf32>
    %19 = math.rsqrt %18 : vector<128x1xf32>
    %20 = vector.broadcast %19 : vector<128x1xf32> to vector<128x128xf32>
    %21 = arith.mulf %11, %20 : vector<128x128xf32>
    %c0_10 = arith.constant 0 : index
    %c0_11 = arith.constant 0 : index
    %22 = vector.load %arg4[%c0_10, %c0_11] : memref<1x128xf32, #tpu.memory_space<vmem>>, vector<1x128xf32>
    %23 = vector.broadcast %22 : vector<1x128xf32> to vector<128x128xf32>
    %24 = arith.mulf %21, %23 : vector<128x128xf32>
    %c0_12 = arith.constant 0 : index
    %c0_13 = arith.constant 0 : index
    %25 = vector.load %arg5[%c0_12, %c0_13] : memref<1x128xf32, #tpu.memory_space<vmem>>, vector<1x128xf32>
    %26 = vector.broadcast %25 : vector<1x128xf32> to vector<128x128xf32>
    %27 = arith.addf %24, %26 : vector<128x128xf32>
    %c0_14 = arith.constant 0 : index
    %c0_15 = arith.constant 0 : index
    %28 = vector.load %arg6[%c0_14, %c0_15] : memref<128x128xf32, #tpu.memory_space<vmem>>, vector<128x128xf32>
    tpu.vector_store %arg6[%c0_14, %c0_15], %27 {strides = array<i32>} : memref<128x128xf32, #tpu.memory_space<vmem>>, vector<128x128xf32>,
    return
  }
  func.func @transform_0(%arg0: i32) -> (i32, i32) {
    %c0_i32 = arith.constant 0 : i32
    %c0_i32_0 = arith.constant 0 : i32
    return %arg0, %c0_i32 : i32, i32
  }
  func.func @transform_1(%arg0: i32) -> (i32, i32) {
    %c0_i32 = arith.constant 0 : i32
    %c0_i32_0 = arith.constant 0 : i32
    %c0_i32_1 = arith.constant 0 : i32
    return %c0_i32, %c0_i32_0 : i32, i32
  }
  func.func @transform_2(%arg0: i32) -> (i32, i32) {
    %c0_i32 = arith.constant 0 : i32
    %c0_i32_0 = arith.constant 0 : i32
    %c0_i32_1 = arith.constant 0 : i32
    return %c0_i32, %c0_i32_0 : i32, i32
  }
  func.func @transform_3(%arg0: i32) -> (i32, i32) {
    %c0_i32 = arith.constant 0 : i32
    %c0_i32_0 = arith.constant 0 : i32
    %c0_i32_1 = arith.constant 0 : i32
    return %c0_i32, %c0_i32_0 : i32, i32
  }
  func.func @transform_4(%arg0: i32) -> (i32, i32) {
    %c0_i32 = arith.constant 0 : i32
    %c0_i32_0 = arith.constant 0 : i32
    %c0_i32_1 = arith.constant 0 : i32
    return %c0_i32, %c0_i32_0 : i32, i32
  }
  func.func @transform_5(%arg0: i32) -> (i32, i32) {
    %c0_i32 = arith.constant 0 : i32
    %c0_i32_0 = arith.constant 0 : i32
    return %arg0, %c0_i32 : i32, i32
  }
}

</mosaic_0001>

<bundles_post_ra>
// kernel: patch_embed_forward.1
= control target key start
LH: loop header
LB: loop body
LE: loop exit
PB: predicated region body
PF: predicated region fallthrough
CT: control target
= control target key end

     0   :  { %s1081_s0 = inlined_call_operand.vmem [shape: bf16[128,32], index: 0, kind: input, shape index: {}]   ;;  %s1082_s1 = inlined_call_operand.vmem [shape: bf16[32,128], index: 1, kind: input, shape index: {}]   ;;  %s1083_s2 = inlined_call_operand.vmem [shape: f32[1,128], index: 2, kind: input, shape index: {}]   ;;  %s1084_s3 = inlined_call_operand.vmem [shape: f32[1,128], index: 3, kind: input, shape index: {}]   ;;  %s1085_s4 = inlined_call_operand.vmem [shape: f32[1,128], index: 4, kind: input, shape index: {}]   ;;  %s1086_s5 = inlined_call_operand.hbm [shape: f32[128,128], index: 5, kind: output, shape index: {}]  }
   0x1   :  { %v630_v0 = vld [vmem:[%s1082_s1 + $0x8] sm:$0xff]  ;;  %v629_v1 = vld [vmem:[%s1082_s1] sm:$0xff] }
   0x2   :  { %129 = vmatpush.bf16.msra.mxu0 %v630_v0  ;;  %631 = vmatpush.bf16.msra.mxu1 %v630_v0 }
   0x3   :  { %632 = vmatpush.bf16.msra.mxu2 %v630_v0  ;;  %633 = vmatpush.bf16.msra.mxu3 %v630_v0 }
   0x4   :  { %10 = vsyncpa [#allocation3], 0  ;;  %v621_v2 = vld [vmem:[%s1081_s0] sm:$0xff]  ;;  %v623_v3 = vld [vmem:[%s1081_s0 + $0x10] sm:$0xff]  ;;  %vm98_vm0 = vcmask 261120   ;;  %v704_v43 = vmov 128.0  }
   0x5   :  { %v625_v4 = vld [vmem:[%s1081_s0 + $0x20] sm:$0xff]  ;;  %v627_v5 = vld [vmem:[%s1081_s0 + $0x30] sm:$0xff]  ;;  %v622_v6 = vld [vmem:[%s1081_s0 + $0x8] sm:$0xff]  ;;  %644 = vrcp.f32 %v704_v43  ;;  %s561_s18 = sshll.u32 %s1086_s5, 4  ;;  %s706_s19 = smov 128   ;;  %s562_s18 = int_to_ptr.hbm [resolvable:$true] %s561_s18 }
   0x6   :  { %130 = vmatpush.bf16.msra.mxu0 %v629_v1  ;;  %634 = vmatpush.bf16.msra.mxu1 %v629_v1  ;;  %v624_v7 = vld [vmem:[%s1081_s0 + $0x18] sm:$0xff]  ;;  %v626_v8 = vld [vmem:[%s1081_s0 + $0x28] sm:$0xff]  ;;  %v641_v10 = vld [vmem:[%s1083_s2] ss:$0 sm:$0xff]  ;;  %s707_s20 = smov 8  }
   0x7   :  { %635 = vmatpush.bf16.msra.mxu2 %v629_v1  ;;  %636 = vmatpush.bf16.msra.mxu3 %v629_v1  ;;  %v628_v9 = vld [vmem:[%s1081_s0 + $0x38] sm:$0xff] }
   0x9   :  { %613 = vmatmul.msk.bf16.vlgmr.msra.gmra.mxu0 %vm98_vm0, %v621_v2  ;;  %615 = vmatmul.msk.bf16.vlgmr.msra.gmra.mxu1 %vm98_vm0, %v623_v3 }
   0xa   :  { %617 = vmatmul.msk.bf16.vlgmr.msra.gmra.mxu2 %vm98_vm0, %v625_v4  ;;  %619 = vmatmul.msk.bf16.vlgmr.msra.gmra.mxu3 %vm98_vm0, %v627_v5 }
   0xb   :  { %v645_v44 = vpop.eup %644 }
   0xc   :  { %v205_v45 = vmul.f32 128.0, %v645_v44  ;;  %vm209_vm1 = vweird.f32 %v645_v44 }
   0xe   :  { %v206_v46 = vsub.f32 1.0, %v205_v45 }
  0x10   :  { %v207_v47 = vmul.f32 %v645_v44, %v206_v46 }
  0x12   :  { %v208_v48 = vadd.f32 %v645_v44, %v207_v47 }
  0x14   :  { %v821_v49 = vsel %vm209_vm1, %v645_v44, %v208_v48 }
  0x19   :  { %614 = vmatmul.msk.bf16.gmra.mxu0 %vm98_vm0, %v622_v6  ;;  %616 = vmatmul.msk.bf16.gmra.mxu1 %vm98_vm0, %v624_v7 }
  0x1a   :  { %618 = vmatmul.msk.bf16.gmra.mxu2 %vm98_vm0, %v626_v8  ;;  %620 = vmatmul.msk.bf16.gmra.mxu3 %vm98_vm0, %v628_v9 }
  0x86   :  { %v132_v11 = vpop.f32.mrf.mxu0  ;;  %v142_v12 = vpop.f32.mrf.mxu1 }
  0x87   :  { %v133_v13 = vadd.f32 %v641_v10, %v132_v11  ;;  %v143_v14 = vadd.f32 %v641_v10, %v142_v12 }
  0x89   :  { %180 = vadd.xlane.f32.xlu2 %v143_v14  ;;  %172 = vadd.xlane.f32.xlu0 %v133_v13 }
  0x8d   :  { %v152_v15 = vpop.f32.mrf.mxu2  ;;  %v162_v16 = vpop.f32.mrf.mxu3 }
  0x8e   :  { %v779_v17 = vadd.f32 %v641_v10, %v152_v15  ;;  %v781_v18 = vadd.f32 %v641_v10, %v162_v16  ;;  %v134_v19 = vpop.f32.mrf.mxu0  ;;  %v144_v20 = vpop.f32.mrf.mxu1 }
  0x8f   :  { %v787_v24 = vadd.f32 %v641_v10, %v134_v19  ;;  %v789_v25 = vadd.f32 %v641_v10, %v144_v20 }
  0x91   :  { %188 = vadd.xlane.f32.xlu2 %v779_v17  ;;  %196 = vadd.xlane.f32.xlu0 %v781_v18 }
  0x95   :  { %v154_v21 = vpop.f32.mrf.mxu2  ;;  %v164_v22 = vpop.f32.mrf.mxu3 }
  0x96   :  { %v785_v23 = vadd.f32 %v641_v10, %v164_v22  ;;  %v137_v26 = vpop.f32.mrf.mxu0  ;;  %v796_v29 = vadd.f32 %v641_v10, %v154_v21  ;;  %v147_v32 = vpop.f32.mrf.mxu1 }
  0x97   :  { %v794_v27 = vadd.f32 %v641_v10, %v137_v26  ;;  %v802_v33 = vadd.f32 %v641_v10, %v147_v32 }
  0x98   :  { %198 = vadd.xlane.f32.xlu1 %v785_v23 }
  0x99   :  { %182 = vadd.xlane.f32.xlu2 %v789_v25  ;;  %174 = vadd.xlane.f32.xlu0 %v787_v24 }
  0x9d   :  { %v157_v28 = vpop.f32.mrf.mxu2  ;;  %v167_v30 = vpop.f32.mrf.mxu3 }
  0x9e   :  { %v800_v31 = vadd.f32 %v641_v10, %v157_v28  ;;  %v139_v37 = vpop.f32.mrf.mxu0  ;;  %v809_v38 = vadd.f32 %v641_v10, %v167_v30  ;;  %v149_v41 = vpop.f32.mrf.mxu1 }
  0x9f   :  { %v813_v40 = vadd.f32 %v641_v10, %v139_v37  ;;  %v818_v42 = vadd.f32 %v641_v10, %v149_v41 }
  0xa0   :  { %176 = vadd.xlane.f32.xlu1 %v794_v27 }
  0xa1   :  { %190 = vadd.xlane.f32.xlu0 %v796_v29 }
  0xa5   :  { %v159_v34 = vpop.f32.mrf.mxu2  ;;  %v169_v36 = vpop.f32.mrf.mxu3 }
  0xa6   :  { %v804_v35 = vadd.f32 %v641_v10, %v159_v34  ;;  %v811_v39 = vadd.f32 %v641_v10, %v169_v36 }
  0xa8   :  { %194 = vadd.xlane.f32.xlu2 %v804_v35  ;;  %192 = vadd.xlane.f32.xlu1 %v800_v31 }
  0xa9   :  { %184 = vadd.xlane.f32.xlu0 %v802_v33 }
  0xb0   :  { %200 = vadd.xlane.f32.xlu2 %v809_v38  ;;  %178 = vadd.xlane.f32.xlu1 %v813_v40 }
  0xb1   :  { %202 = vadd.xlane.f32.xlu0 %v811_v39 }
  0xb8   :  { %186 = vadd.xlane.f32.xlu1 %v818_v42 }
  0xfc   :  { %v181_v50 = vpop.xlane.xlu2 %180  ;;  %v173_v51 = vpop.xlane.xlu0 %172 }
  0xfd   :  { %v215_v52 = vmul.f32 %v821_v49, %v181_v50  ;;  %v211_v53 = vmul.f32 %v821_v49, %v173_v51 }
  0xff   :  { %v825_v54 = vsub.f32 %v143_v14, %v215_v52  ;;  %v827_v55 = vsub.f32 %v133_v13, %v211_v53 }
 0x101   :  { %v247_v56 = vmul.f32 %v825_v54, %v825_v54  ;;  %v243_v57 = vmul.f32 %v827_v55, %v827_v55 }
 0x103   :  { %267 = vadd.xlane.f32.xlu2 %v247_v56  ;;  %259 = vadd.xlane.f32.xlu1 %v243_v57 }
 0x104   :  { %v189_v58 = vpop.xlane.xlu2 %188  ;;  %v197_v59 = vpop.xlane.xlu0 %196 }
 0x105   :  { %v219_v60 = vmul.f32 %v821_v49, %v189_v58  ;;  %v223_v61 = vmul.f32 %v821_v49, %v197_v59 }
 0x107   :  { %v836_v62 = vsub.f32 %v779_v17, %v219_v60  ;;  %v839_v63 = vsub.f32 %v781_v18, %v223_v61 }
 0x109   :  { %v251_v0 = vmul.f32 %v836_v62, %v836_v62  ;;  %v255_v1 = vmul.f32 %v839_v63, %v839_v63 }
 0x10b   :  { %v199_v2 = vpop.xlane.xlu1 %198  ;;  %275 = vadd.xlane.f32.xlu0 %v251_v0  ;;  %283 = vadd.xlane.f32.xlu1 %v255_v1 }
 0x10c   :  { %v183_v3 = vpop.xlane.xlu2 %182  ;;  %v175_v4 = vpop.xlane.xlu0 %174  ;;  %v224_v48 = vmul.f32 %v821_v49, %v199_v2 }
 0x10d   :  { %v216_v5 = vmul.f32 %v821_v49, %v183_v3  ;;  %v212_v6 = vmul.f32 %v821_v49, %v175_v4 }
 0x10e   :  { %v913_v52 = vsub.f32 %v785_v23, %v224_v48 }
 0x10f   :  { %v848_v7 = vsub.f32 %v789_v25, %v216_v5  ;;  %v851_v8 = vsub.f32 %v787_v24, %v212_v6 }
 0x111   :  { %v248_v9 = vmul.f32 %v848_v7, %v848_v7  ;;  %v244_v10 = vmul.f32 %v851_v8, %v851_v8 }
 0x113   :  { %v177_v11 = vpop.xlane.xlu1 %176  ;;  %269 = vadd.xlane.f32.xlu0 %v248_v9  ;;  %261 = vadd.xlane.f32.xlu2 %v244_v10 }
 0x114   :  { %v213_v12 = vmul.f32 %v821_v49, %v177_v11  ;;  %v191_v13 = vpop.xlane.xlu0 %190 }
 0x115   :  { %v220_v14 = vmul.f32 %v821_v49, %v191_v13 }
 0x116   :  { %v860_v15 = vsub.f32 %v794_v27, %v213_v12 }
 0x117   :  { %v863_v16 = vsub.f32 %v796_v29, %v220_v14 }
 0x118   :  { %v245_v17 = vmul.f32 %v860_v15, %v860_v15 }
 0x119   :  { %v252_v18 = vmul.f32 %v863_v16, %v863_v16 }
 0x11b   :  { %v195_v19 = vpop.xlane.xlu2 %194  ;;  %v193_v20 = vpop.xlane.xlu1 %192  ;;  %263 = vadd.xlane.f32.xlu0 %v245_v17  ;;  %277 = vadd.xlane.f32.xlu1 %v252_v18 }
 0x11c   :  { %v222_v21 = vmul.f32 %v821_v49, %v195_v19  ;;  %v221_v22 = vmul.f32 %v821_v49, %v193_v20  ;;  %v185_v24 = vpop.xlane.xlu0 %184 }
 0x11d   :  { %v217_v25 = vmul.f32 %v821_v49, %v185_v24 }
 0x11e   :  { %v873_v26 = vsub.f32 %v804_v35, %v222_v21  ;;  %v876_v27 = vsub.f32 %v800_v31, %v221_v22 }
 0x11f   :  { %v879_v28 = vsub.f32 %v802_v33, %v217_v25 }
 0x120   :  { %v253_v29 = vmul.f32 %v876_v27, %v876_v27  ;;  %v254_v30 = vmul.f32 %v873_v26, %v873_v26 }
 0x121   :  { %v249_v32 = vmul.f32 %v879_v28, %v879_v28 }
 0x122   :  { %279 = vadd.xlane.f32.xlu2 %v253_v29 }
 0x123   :  { %v201_v34 = vpop.xlane.xlu2 %200  ;;  %v179_v36 = vpop.xlane.xlu1 %178  ;;  %281 = vadd.xlane.f32.xlu0 %v254_v30  ;;  %271 = vadd.xlane.f32.xlu1 %v249_v32  ;;  %v937_v32 = vld [vmem:[%s1084_s3] ss:$0 sm:$0xff]  ;;  %s705_s3 = smov [#allocation2]  }
 0x124   :  { %v225_v31 = vmul.f32 %v821_v49, %v201_v34  ;;  %v214_v35 = vmul.f32 %v821_v49, %v179_v36  ;;  %v203_v41 = vpop.xlane.xlu0 %202 }
 0x125   :  { %v226_v43 = vmul.f32 %v821_v49, %v203_v41  ;;  %v945_v41 = vld [vmem:[%s1085_s4] ss:$0 sm:$0xff]  ;;  %s559_s4 = sshll.u32 %s705_s3, 4  ;;  %s560_s4 = int_to_ptr.vmem [resolvable:$true] %s559_s4 }
 0x126   :  { %v890_v33 = vsub.f32 %v809_v38, %v225_v31  ;;  %v893_v37 = vsub.f32 %v813_v40, %v214_v35 }
 0x127   :  { %v902_v38 = vsub.f32 %v811_v39, %v226_v43  ;;  %v256_v39 = vmul.f32 %v913_v52, %v913_v52 }
 0x128   :  { %v257_v44 = vmul.f32 %v890_v33, %v890_v33  ;;  %v246_v45 = vmul.f32 %v893_v37, %v893_v37 }
 0x129   :  { %v258_v51 = vmul.f32 %v902_v38, %v902_v38 }
 0x12b   :  { %v187_v46 = vpop.xlane.xlu1 %186  ;;  %287 = vadd.xlane.f32.xlu0 %v257_v44  ;;  %265 = vadd.xlane.f32.xlu1 %v246_v45 }
 0x12c   :  { %v218_v47 = vmul.f32 %v821_v49, %v187_v46 }
 0x12e   :  { %v905_v40 = vsub.f32 %v818_v42, %v218_v47 }
 0x130   :  { %v250_v50 = vmul.f32 %v905_v40, %v905_v40 }
 0x132   :  { %273 = vadd.xlane.f32.xlu2 %v250_v50 }
 0x133   :  { %289 = vadd.xlane.f32.xlu1 %v258_v51 }
 0x13a   :  { %285 = vadd.xlane.f32.xlu2 %v256_v39 }
 0x176   :  { %v268_v53 = vpop.xlane.xlu2 %267  ;;  %v260_v42 = vpop.xlane.xlu1 %259 }
 0x177   :  { %v295_v56 = vmul.f32 %v268_v53, %v821_v49  ;;  %v291_v57 = vmul.f32 %v260_v42, %v821_v49 }
 0x179   :  { %v311_v58 = vadd.f32 1e-05, %v295_v56  ;;  %v307_v59 = vadd.f32 1e-05, %v291_v57 }
 0x17b   :  { %646 = vrsqrt.f32 %v311_v58  ;;  %vm369_vm4 = vweird.f32 %v311_v58  ;;  %vm329_vm6 = vweird.f32 %v307_v59 }
 0x17c   :  { %648 = vrsqrt.f32 %v307_v59 }
 0x17e   :  { %v284_v60 = vpop.xlane.xlu1 %283  ;;  %v276_v61 = vpop.xlane.xlu0 %275 }
 0x17f   :  { %v303_v0 = vmul.f32 %v284_v60, %v821_v49  ;;  %v299_v23 = vmul.f32 %v276_v61, %v821_v49 }
 0x181   :  { %v647_v1 = vpop.eup %646  ;;  %v921_v2 = vadd.f32 1e-05, %v303_v0  ;;  %v923_v3 = vadd.f32 1e-05, %v299_v23 }
 0x182   :  { %v649_v4 = vpop.eup %648  ;;  %v364_v5 = vmul.f32 %v647_v1, %v311_v58  ;;  %vm370_vm2 = vweird.f32 %v647_v1 }
 0x183   :  { %v324_v6 = vmul.f32 %v649_v4, %v307_v59  ;;  %650 = vrsqrt.f32 %v921_v2  ;;  %vm330_vm3 = vweird.f32 %v649_v4  ;;  %vm371_vm5 = vmor %vm369_vm4, %vm370_vm2  ;;  %vm449_vm10 = vweird.f32 %v921_v2 }
 0x184   :  { %v365_v9 = vmul.f32 %v647_v1, %v364_v5  ;;  %652 = vrsqrt.f32 %v923_v3  ;;  %vm331_vm7 = vmor %vm329_vm6, %vm330_vm3  ;;  %vm409_vm12 = vweird.f32 %v923_v3 }
 0x185   :  { %v325_v10 = vmul.f32 %v649_v4, %v324_v6 }
 0x186   :  { %v366_v11 = vmul.f32 0.5, %v365_v9  ;;  %v262_v12 = vpop.xlane.xlu2 %261  ;;  %v270_v13 = vpop.xlane.xlu0 %269 }
 0x187   :  { %v326_v14 = vmul.f32 0.5, %v325_v10  ;;  %v292_v17 = vmul.f32 %v262_v12, %v821_v49  ;;  %v296_v18 = vmul.f32 %v270_v13, %v821_v49 }
 0x188   :  { %v367_v19 = vsub.f32 1.5, %v366_v11 }
 0x189   :  { %v651_v20 = vpop.eup %650  ;;  %v327_v21 = vsub.f32 1.5, %v326_v14  ;;  %v929_v22 = vadd.f32 1e-05, %v292_v17  ;;  %v931_v24 = vadd.f32 1e-05, %v296_v18 }
 0x18a   :  { %v653_v25 = vpop.eup %652  ;;  %v368_v29 = vmul.f32 %v647_v1, %v367_v19  ;;  %v444_v30 = vmul.f32 %v651_v20, %v921_v2  ;;  %vm450_vm8 = vweird.f32 %v651_v20 }
 0x18b   :  { %v328_v34 = vmul.f32 %v649_v4, %v327_v21  ;;  %v404_v36 = vmul.f32 %v653_v25, %v923_v3  ;;  %654 = vrsqrt.f32 %v929_v22  ;;  %vm410_vm9 = vweird.f32 %v653_v25  ;;  %vm451_vm11 = vmor %vm449_vm10, %vm450_vm8 }
 0x18c   :  { %v372_v31 = vsel %vm371_vm5, %v647_v1, %v368_v29  ;;  %v445_v35 = vmul.f32 %v651_v20, %v444_v30  ;;  %656 = vrsqrt.f32 %v931_v24  ;;  %vm411_vm13 = vmor %vm409_vm12, %vm410_vm9  ;;  %vm339_vm14 = vweird.f32 %v929_v22 }
 0x18d   :  { %v487_v43 = vmul.f32 %v372_v31, %v825_v54  ;;  %v332_v44 = vsel %vm331_vm7, %v649_v4, %v328_v34  ;;  %v405_v45 = vmul.f32 %v653_v25, %v404_v36  ;;  %vm379_vm2 = vweird.f32 %v931_v24 }
 0x18e   :  { %v483_v46 = vmul.f32 %v332_v44, %v827_v55  ;;  %v446_v47 = vmul.f32 0.5, %v445_v35  ;;  %v278_v48 = vpop.xlane.xlu1 %277  ;;  %v264_v50 = vpop.xlane.xlu0 %263 }
 0x18f   :  { %v507_v51 = vmul.f32 %v937_v32, %v487_v43  ;;  %v406_v39 = vmul.f32 0.5, %v405_v45  ;;  %v300_v53 = vmul.f32 %v278_v48, %v821_v49  ;;  %v293_v42 = vmul.f32 %v264_v50, %v821_v49 }
 0x190   :  { %v503_v56 = vmul.f32 %v937_v32, %v483_v46  ;;  %v447_v57 = vsub.f32 1.5, %v446_v47 }
 0x191   :  { %v655_v54 = vpop.eup %654  ;;  %v527_v58 = vadd.f32 %v945_v41, %v507_v51  ;;  %v407_v59 = vsub.f32 1.5, %v406_v39  ;;  %v954_v55 = vadd.f32 1e-05, %v300_v53  ;;  %v956_v60 = vadd.f32 1e-05, %v293_v42 }
 0x192   :  { %v657_v61 = vpop.eup %656  ;;  %v523_v0 = vadd.f32 %v945_v41, %v503_v56  ;;  %v448_v23 = vmul.f32 %v651_v20, %v447_v57  ;;  %v334_v1 = vmul.f32 %v655_v54, %v929_v22  ;;  %vm340_vm15 = vweird.f32 %v655_v54 }
 0x193   :  { %543 = vst [vmem:[#allocation2 + $0x20] sm:$0xff] %v527_v58  ;;  %v408_v4 = vmul.f32 %v653_v25, %v407_v59  ;;  %v374_v5 = vmul.f32 %v657_v61, %v931_v24  ;;  %658 = vrsqrt.f32 %v954_v55  ;;  %vm380_vm0 = vweird.f32 %v657_v61  ;;  %vm341_vm1 = vmor %vm339_vm14, %vm340_vm15 }
 0x194   :  { %539 = vst [vmem:[#allocation2] sm:$0xff] %v523_v0  ;;  %v452_v6 = vsel %vm451_vm11, %v651_v20, %v448_v23  ;;  %v335_v9 = vmul.f32 %v655_v54, %v334_v1  ;;  %660 = vrsqrt.f32 %v956_v60  ;;  %vm381_vm3 = vmor %vm379_vm2, %vm380_vm0  ;;  %vm419_vm6 = vweird.f32 %v954_v55 }
 0x195   :  { %v495_v2 = vmul.f32 %v452_v6, %v839_v63  ;;  %v412_v10 = vsel %vm411_vm13, %v653_v25, %v408_v4  ;;  %v375_v11 = vmul.f32 %v657_v61, %v374_v5  ;;  %v280_v12 = vpop.xlane.xlu2 %279  ;;  %vm349_vm8 = vweird.f32 %v956_v60 }
 0x196   :  { %v491_v13 = vmul.f32 %v412_v10, %v836_v62  ;;  %v336_v14 = vmul.f32 0.5, %v335_v9  ;;  %v301_v3 = vmul.f32 %v280_v12, %v821_v49  ;;  %v272_v17 = vpop.xlane.xlu1 %271  ;;  %v282_v18 = vpop.xlane.xlu0 %281 }
 0x197   :  { %v515_v19 = vmul.f32 %v937_v32, %v495_v2  ;;  %v376_v20 = vmul.f32 0.5, %v375_v11  ;;  %v297_v21 = vmul.f32 %v272_v17, %v821_v49  ;;  %v302_v29 = vmul.f32 %v282_v18, %v821_v49 }
 0x198   :  { %v511_v63 = vmul.f32 %v937_v32, %v491_v13  ;;  %v337_v25 = vsub.f32 1.5, %v336_v14  ;;  %v974_v30 = vadd.f32 1e-05, %v301_v3 }
 0x199   :  { %v659_v62 = vpop.eup %658  ;;  %v535_v34 = vadd.f32 %v945_v41, %v515_v19  ;;  %v377_v36 = vsub.f32 1.5, %v376_v20  ;;  %v977_v31 = vadd.f32 1e-05, %v297_v21  ;;  %v981_v46 = vadd.f32 1e-05, %v302_v29 }
 0x19a   :  { %v661_v35 = vpop.eup %660  ;;  %v531_v43 = vadd.f32 %v945_v41, %v511_v63  ;;  %v338_v44 = vmul.f32 %v655_v54, %v337_v25  ;;  %v414_v45 = vmul.f32 %v659_v62, %v954_v55  ;;  %662 = vrsqrt.f32 %v974_v30 }
 0x19b   :  { %551 = vst [vmem:[#allocation2 + $0x60] sm:$0xff] %v535_v34  ;;  %v378_v47 = vmul.f32 %v657_v61, %v377_v36  ;;  %v344_v48 = vmul.f32 %v661_v35, %v956_v60  ;;  %664 = vrsqrt.f32 %v977_v31  ;;  %vm420_vm4 = vweird.f32 %v659_v62 }
 0x19c   :  { %547 = vst [vmem:[#allocation2 + $0x40] sm:$0xff] %v531_v43  ;;  %v342_v50 = vsel %vm341_vm1, %v655_v54, %v338_v44  ;;  %v415_v51 = vmul.f32 %v659_v62, %v414_v45  ;;  %666 = vrsqrt.f32 %v981_v46  ;;  %vm350_vm5 = vweird.f32 %v661_v35  ;;  %vm421_vm7 = vmor %vm419_vm6, %vm420_vm4 }
 0x19d   :  { %v484_v39 = vmul.f32 %v342_v50, %v851_v8  ;;  %v382_v53 = vsel %vm381_vm3, %v657_v61, %v378_v47  ;;  %v345_v42 = vmul.f32 %v661_v35, %v344_v48  ;;  %vm351_vm9 = vmor %vm349_vm8, %vm350_vm5  ;;  %vm429_vm10 = vweird.f32 %v974_v30 }
 0x19e   :  { %v488_v22 = vmul.f32 %v382_v53, %v848_v7  ;;  %v416_v56 = vmul.f32 0.5, %v415_v51  ;;  %v266_v24 = vpop.xlane.xlu1 %265  ;;  %v288_v57 = vpop.xlane.xlu0 %287  ;;  %vm389_vm11 = vweird.f32 %v977_v31  ;;  %vm439_vm1 = vweird.f32 %v981_v46 }
 0x19f   :  { %v504_v58 = vmul.f32 %v937_v32, %v484_v39  ;;  %v346_v59 = vmul.f32 0.5, %v345_v42  ;;  %v294_v54 = vmul.f32 %v266_v24, %v821_v49  ;;  %v305_v0 = vmul.f32 %v288_v57, %v821_v49 }
 0x1a0   :  { %v508_v23 = vmul.f32 %v937_v32, %v488_v22  ;;  %v417_v1 = vsub.f32 1.5, %v416_v56  ;;  %v997_v8 = vpop.eup %662 }
 0x1a1   :  { %v524_v7 = vadd.f32 %v945_v41, %v504_v58  ;;  %v347_v61 = vsub.f32 1.5, %v346_v59  ;;  %v1000_v4 = vadd.f32 1e-05, %v294_v54  ;;  %v1002_v5 = vadd.f32 1e-05, %v305_v0  ;;  %v1004_v6 = vpop.eup %664 }
 0x1a2   :  { %v528_v9 = vadd.f32 %v945_v41, %v508_v23  ;;  %v418_v2 = vmul.f32 %v659_v62, %v417_v1  ;;  %v424_v10 = vmul.f32 %v997_v8, %v974_v30  ;;  %v384_v12 = vmul.f32 %v1004_v6, %v977_v31  ;;  %v667_v13 = vpop.eup %666 }
 0x1a3   :  { %540 = vst [vmem:[#allocation2 + $0x8] sm:$0xff] %v524_v7  ;;  %v348_v11 = vmul.f32 %v661_v35, %v347_v61  ;;  %668 = vrsqrt.f32 %v1000_v4  ;;  %v434_v60 = vmul.f32 %v667_v13, %v981_v46  ;;  %vm430_vm12 = vweird.f32 %v997_v8 }
 0x1a4   :  { %544 = vst [vmem:[#allocation2 + $0x28] sm:$0xff] %v528_v9  ;;  %v422_v14 = vsel %vm421_vm7, %v659_v62, %v418_v2  ;;  %v425_v55 = vmul.f32 %v997_v8, %v424_v10  ;;  %670 = vrsqrt.f32 %v1002_v5  ;;  %v385_v18 = vmul.f32 %v1004_v6, %v384_v12  ;;  %vm431_vm14 = vmor %vm429_vm10, %vm430_vm12 }
 0x1a5   :  { %v492_v3 = vmul.f32 %v422_v14, %v863_v16  ;;  %v352_v17 = vsel %vm351_vm9, %v661_v35, %v348_v11  ;;  %v274_v19 = vpop.xlane.xlu2 %273  ;;  %v435_v25 = vmul.f32 %v667_v13, %v434_v60  ;;  %vm390_vm13 = vweird.f32 %v1004_v6 }
 0x1a6   :  { %v485_v20 = vmul.f32 %v352_v17, %v860_v15  ;;  %v426_v21 = vmul.f32 0.5, %v425_v55  ;;  %v386_v63 = vmul.f32 0.5, %v385_v18  ;;  %v298_v62 = vmul.f32 %v274_v19, %v821_v49  ;;  %v290_v16 = vpop.xlane.xlu1 %289  ;;  %vm391_vm0 = vmor %vm389_vm11, %vm390_vm13 }
 0x1a7   :  { %v512_v29 = vmul.f32 %v937_v32, %v492_v3  ;;  %v436_v44 = vmul.f32 0.5, %v435_v25  ;;  %v306_v39 = vmul.f32 %v290_v16, %v821_v49  ;;  %vm440_vm15 = vweird.f32 %v667_v13 }
 0x1a8   :  { %v505_v34 = vmul.f32 %v937_v32, %v485_v20  ;;  %v427_v36 = vsub.f32 1.5, %v426_v21  ;;  %v387_v43 = vsub.f32 1.5, %v386_v63  ;;  %v1029_v45 = vadd.f32 1e-05, %v298_v62  ;;  %vm441_vm2 = vmor %vm439_vm1, %vm440_vm15 }
 0x1a9   :  { %v669_v15 = vpop.eup %668  ;;  %v532_v35 = vadd.f32 %v945_v41, %v512_v29  ;;  %v437_v42 = vsub.f32 1.5, %v436_v44  ;;  %v322_v1 = vadd.f32 1e-05, %v306_v39  ;;  %vm359_vm5 = vweird.f32 %v1000_v4 }
 0x1aa   :  { %v671_v47 = vpop.eup %670  ;;  %v525_v48 = vadd.f32 %v945_v41, %v505_v34  ;;  %v428_v50 = vmul.f32 %v997_v8, %v427_v36  ;;  %v354_v51 = vmul.f32 %v669_v15, %v1000_v4  ;;  %v388_v53 = vmul.f32 %v1004_v6, %v387_v43 }
 0x1ab   :  { %548 = vst [vmem:[#allocation2 + $0x48] sm:$0xff] %v532_v35  ;;  %v464_v22 = vmul.f32 %v671_v47, %v1002_v5  ;;  %672 = vrsqrt.f32 %v1029_v45  ;;  %v438_v58 = vmul.f32 %v667_v13, %v437_v42  ;;  %vm360_vm3 = vweird.f32 %v669_v15 }
 0x1ac   :  { %541 = vst [vmem:[#allocation2 + $0x10] sm:$0xff] %v525_v48  ;;  %v432_v56 = vsel %vm431_vm14, %v997_v8, %v428_v50  ;;  %v355_v24 = vmul.f32 %v669_v15, %v354_v51  ;;  %v392_v57 = vsel %vm391_vm0, %v1004_v6, %v388_v53  ;;  %674 = vrsqrt.f32 %v322_v1  ;;  %vm361_vm6 = vmor %vm359_vm5, %vm360_vm3 }
 0x1ad   :  { %v493_v30 = vmul.f32 %v432_v56, %v876_v27  ;;  %v465_v59 = vmul.f32 %v671_v47, %v464_v22  ;;  %v286_v54 = vpop.xlane.xlu2 %285  ;;  %v489_v0 = vmul.f32 %v392_v57, %v879_v28  ;;  %v442_v46 = vsel %vm441_vm2, %v667_v13, %v438_v58 }
 0x1ae   :  { %v356_v23 = vmul.f32 0.5, %v355_v24  ;;  %v304_v31 = vmul.f32 %v286_v54, %v821_v49  ;;  %v494_v27 = vmul.f32 %v442_v46, %v873_v26  ;;  %vm470_vm4 = vweird.f32 %v671_v47 }
 0x1af   :  { %v513_v8 = vmul.f32 %v937_v32, %v493_v30  ;;  %v466_v7 = vmul.f32 0.5, %v465_v59  ;;  %v509_v61 = vmul.f32 %v937_v32, %v489_v0  ;;  %vm469_vm7 = vweird.f32 %v1002_v5 }
 0x1b0   :  { %v357_v6 = vsub.f32 1.5, %v356_v23  ;;  %v320_v28 = vadd.f32 1e-05, %v304_v31  ;;  %v514_v49 = vmul.f32 %v937_v32, %v494_v27  ;;  %vm471_vm8 = vmor %vm469_vm7, %vm470_vm4  ;;  %vm399_vm10 = vweird.f32 %v1029_v45 }
 0x1b1   :  { %v533_v9 = vadd.f32 %v945_v41, %v513_v8  ;;  %v467_v2 = vsub.f32 1.5, %v466_v7  ;;  %v673_v10 = vpop.eup %672  ;;  %v529_v11 = vadd.f32 %v945_v41, %v509_v61  ;;  %vm479_vm13 = vweird.f32 %v322_v1 }
 0x1b2   :  { %v358_v12 = vmul.f32 %v669_v15, %v357_v6  ;;  %v394_v26 = vmul.f32 %v673_v10, %v1029_v45  ;;  %676 = vrsqrt.f32 %v320_v28  ;;  %v534_v14 = vadd.f32 %v945_v41, %v514_v49  ;;  %v675_v4 = vpop.eup %674 }
 0x1b3   :  { %549 = vst [vmem:[#allocation2 + $0x50] sm:$0xff] %v533_v9  ;;  %v468_v13 = vmul.f32 %v671_v47, %v467_v2  ;;  %v474_v20 = vmul.f32 %v675_v4, %v322_v1  ;;  %vm400_vm9 = vweird.f32 %v673_v10  ;;  %vm480_vm12 = vweird.f32 %v675_v4 }
 0x1b4   :  { %545 = vst [vmem:[#allocation2 + $0x30] sm:$0xff] %v529_v11  ;;  %v362_v55 = vsel %vm361_vm6, %v669_v15, %v358_v12  ;;  %v395_v18 = vmul.f32 %v673_v10, %v394_v26  ;;  %vm401_vm11 = vmor %vm399_vm10, %vm400_vm9  ;;  %vm459_vm0 = vweird.f32 %v320_v28 }
 0x1b5   :  { %v486_v3 = vmul.f32 %v362_v55, %v893_v37  ;;  %v472_v17 = vsel %vm471_vm8, %v671_v47, %v468_v13  ;;  %550 = vst [vmem:[#allocation2 + $0x58] sm:$0xff] %v534_v14  ;;  %v475_v62 = vmul.f32 %v675_v4, %v474_v20  ;;  %vm481_vm14 = vmor %vm479_vm13, %vm480_vm12 }
 0x1b6   :  { %v497_v60 = vmul.f32 %v472_v17, %v890_v33  ;;  %v396_v5 = vmul.f32 0.5, %v395_v18 }
 0x1b7   :  { %v506_v19 = vmul.f32 %v937_v32, %v486_v3  ;;  %v476_v33 = vmul.f32 0.5, %v475_v62 }
 0x1b8   :  { %v517_v21 = vmul.f32 %v937_v32, %v497_v60  ;;  %v677_v29 = vpop.eup %676  ;;  %v397_v25 = vsub.f32 1.5, %v396_v5 }
 0x1b9   :  { %v526_v63 = vadd.f32 %v945_v41, %v506_v19  ;;  %v454_v16 = vmul.f32 %v677_v29, %v320_v28  ;;  %v477_v35 = vsub.f32 1.5, %v476_v33  ;;  %vm460_vm15 = vweird.f32 %v677_v29 }
 0x1ba   :  { %v537_v37 = vadd.f32 %v945_v41, %v517_v21  ;;  %v398_v34 = vmul.f32 %v673_v10, %v397_v25  ;;  %vm461_vm1 = vmor %vm459_vm0, %vm460_vm15 }
 0x1bb   :  { %542 = vst [vmem:[#allocation2 + $0x18] sm:$0xff] %v526_v63  ;;  %v455_v36 = vmul.f32 %v677_v29, %v454_v16  ;;  %v478_v47 = vmul.f32 %v675_v4, %v477_v35 }
 0x1bc   :  { %553 = vst [vmem:[#allocation2 + $0x70] sm:$0xff] %v537_v37  ;;  %v402_v15 = vsel %vm401_vm11, %v673_v10, %v398_v34 }
 0x1bd   :  { %v490_v43 = vmul.f32 %v402_v15, %v905_v40  ;;  %v456_v44 = vmul.f32 0.5, %v455_v36  ;;  %v482_v51 = vsel %vm481_vm14, %v675_v4, %v478_v47 }
 0x1be   :  { %v498_v39 = vmul.f32 %v482_v51, %v902_v38 }
 0x1bf   :  { %v510_v48 = vmul.f32 %v937_v32, %v490_v43  ;;  %v457_v50 = vsub.f32 1.5, %v456_v44 }
 0x1c0   :  { %v518_v42 = vmul.f32 %v937_v32, %v498_v39 }
 0x1c1   :  { %v530_v45 = vadd.f32 %v945_v41, %v510_v48  ;;  %v458_v53 = vmul.f32 %v677_v29, %v457_v50 }
 0x1c2   :  { %v538_v56 = vadd.f32 %v945_v41, %v518_v42 }
 0x1c3   :  { %546 = vst [vmem:[#allocation2 + $0x38] sm:$0xff] %v530_v45  ;;  %v462_v40 = vsel %vm461_vm1, %v677_v29, %v458_v53 }
 0x1c4   :  { %v496_v22 = vmul.f32 %v462_v40, %v913_v52  ;;  %554 = vst [vmem:[#allocation2 + $0x78] sm:$0xff] %v538_v56 }
 0x1c6   :  { %v516_v24 = vmul.f32 %v937_v32, %v496_v22 }
 0x1c8   :  { %v536_v38 = vadd.f32 %v945_v41, %v516_v24 }
 0x1ca   :  { %552 = vst [vmem:[#allocation2 + $0x68] sm:$0xff] %v536_v38 }
 0x1cb   :  { %567 = dma.vmem_to_hbm [thread:$0]  %s560_s4, 2048, %s562_s18, [#allocation3], %s706_s19, %s706_s19, %s707_s20  }
 0x1cc   :  { %702 = dma.done.wait [#allocation3], 2048  }
 0x1cd   :  { %703 = vsyncadd [#allocation3], 4294965248 }
 0x1ce   :  { %572 = vsyncpa [#allocation3], 1 }

</bundles_post_ra>
